<compile_context>
chip_gen: v7x
topology: tpu7x:2x2x1
jax: 0.10.0
libtpu: 0.0.40
codegen_flags: <defaults>
</compile_context>

<pallas_src>
import functools

import jax
import jax.numpy as jnp
from jax.experimental import pallas as pl
from jax.experimental.pallas import tpu as pltpu


def _round_up(value, multiple):
    return ((value + multiple - 1) // multiple) * multiple


# ---------------------------------------------------------------------------
# Phase 1: ReLU + transposed-conv-as-one-matmul + per-tile BN partial sums.
# ---------------------------------------------------------------------------
def _conv_stats_kernel(p_ref, w_ref, y_ref, s_ref, q_ref):
    # p_ref: [KKC_pad, TM]    im2col patches, output pixels on the lane axis
    # w_ref: [C_out, KKC_pad] flipped / io-swapped transposed-conv weight
    # y_ref: [C_out, TM]      un-normalized conv output (lane-dense store)
    # s_ref: [1, C_out, 1]    per-tile per-channel sum(y)
    # q_ref: [1, C_out, 1]    per-tile per-channel sum(y*y)
    x = jnp.maximum(p_ref[...], 0.0)                    # fused ReLU (zeros stay zero)
    # Single MXU matmul: contraction over all K*K*C_in taps at once.
    y = jnp.dot(w_ref[...], x, preferred_element_type=jnp.float32)   # [C_out, TM]
    # One-pass BN statistics, fused into the conv epilogue (no re-read of acc).
    s_ref[0] = jnp.sum(y, axis=1, keepdims=True)
    q_ref[0] = jnp.sum(y * y, axis=1, keepdims=True)
    y_ref[...] = y


# ---------------------------------------------------------------------------
# Finalize: batch statistics -> per-channel scale / shift (tiny, grid-less).
# ---------------------------------------------------------------------------
def _bn_finalize_kernel(sum_ref, sq_ref, gamma_ref, beta_ref,
                        scale_ref, shift_ref, *, num_tiles, inv_m, eps):
    # sum_ref / sq_ref: [T, C_out, 1] per-tile partial sums.
    tot = sum_ref[0]
    tot_sq = sq_ref[0]
    for i in range(1, num_tiles):                       # static, tiny unrolled loop
        tot = tot + sum_ref[i]
        tot_sq = tot_sq + sq_ref[i]
    mean = tot * inv_m
    # E[y^2] - E[y]^2; clamp tiny negative values from f32 cancellation.
    # TODO(synk): switch to Welford / per-tile centered sums if activations get large.
    var = jnp.maximum(tot_sq * inv_m - mean * mean, 0.0)
    scale = gamma_ref[...] * jax.lax.rsqrt(var + eps)   # [C_out, 1]
    scale_ref[...] = scale
    shift_ref[...] = beta_ref[...] - mean * scale


# ---------------------------------------------------------------------------
# Phase 2: apply BN as a lane-dense per-channel FMA (in place over y_raw).
# ---------------------------------------------------------------------------
def _bn_apply_kernel(y_ref, scale_ref, shift_ref, o_ref):
    o_ref[...] = y_ref[...] * scale_ref[...] + shift_ref[...]


@functools.partial(jax.jit, static_argnames=(
    "stride", "padding", "dilation", "output_padding", "eps",
    "compute_dtype", "tile_m"))
def relu_upconv_bn(x_nchw, weight, gamma, beta, *, stride, padding, dilation,
                   output_padding, eps=1e-5, compute_dtype=jnp.float32,
                   tile_m=512):
    """ReLU -> ConvTranspose2d(bias=False) -> BatchNorm2d (batch stats, affine).

    x_nchw: [N, C_in, H, W]; weight: [C_in, C_out, K, K] (PyTorch layout);
    gamma/beta: [C_out].  Returns [N, C_out, H_out, W_out] (NCHW, float32).
    """
    n, c_in, h, w = x_nchw.shape
    assert weight.shape[0] == c_in
    c_out, k = weight.shape[1], weight.shape[2]
    s, p, d, op = stride, padding, dilation, output_padding

    h_out = (h - 1) * s - 2 * p + d * (k - 1) + op + 1
    w_out = (w - 1) * s - 2 * p + d * (k - 1) + op + 1
    m = n * h_out * w_out

    # ---- layout plumbing (plain JAX): gather-based im2col of the RAW input.
    # The lhs-dilated (zero-inserted) tensor is never materialized; for every (kh, kw)
    # tap we gather the contributing input pixel (or a structural 0) directly from x.
    x_nhwc = jnp.transpose(x_nchw, (0, 2, 3, 1)).astype(jnp.float32)
    pad_lo = d * (k - 1) - p
    oh = jnp.arange(h_out)
    ow = jnp.arange(w_out)
    taps = []
    for kh in range(k):
        th = oh + kh * d - pad_lo
        ih = th // s
        valid_h = (th % s == 0) & (ih >= 0) & (ih < h)
        rows = jnp.take(x_nhwc, jnp.clip(ih, 0, h - 1), axis=1)      # [N,H_out,W,C]
        for kw in range(k):
            tw = ow + kw * d - pad_lo
            iw = tw // s
            valid_w = (tw % s == 0) & (iw >= 0) & (iw < w)
            g = jnp.take(rows, jnp.clip(iw, 0, w - 1), axis=2)       # [N,H_out,W_out,C]
            mask = (valid_h[:, None] & valid_w[None, :])[None, :, :, None]
            taps.append(jnp.where(mask, g, 0.0))
    patches = jnp.stack(taps, axis=3).reshape(m, k * k * c_in)       # [M, K*K*C_in]

    kkc = k * k * c_in
    kkc_pad = _round_up(kkc, 8)                  # sublane axis of the patch tile
    tm = min(tile_m, _round_up(m, 128))          # lane axis: multiple of 128
    num_tiles = pl.cdiv(m, tm)
    m_pad = num_tiles * tm

    # Pre-transposed patches: output pixels (M) on the lane axis -> lane-dense input.
    patches_t = jnp.zeros((kkc_pad, m_pad), compute_dtype)
    patches_t = patches_t.at[:kkc, :m].set(patches.T.astype(compute_dtype))

    # Equivalent forward-conv weight: flip spatially, swap in/out channels, flatten
    # taps to match the patch row ordering (kh, kw, ci).
    w_conv = jnp.transpose(weight[:, :, ::-1, ::-1], (2, 3, 0, 1))   # [K,K,C_in,C_out]
    w_t = jnp.zeros((c_out, kkc_pad), compute_dtype)
    w_t = w_t.at[:, :kkc].set(w_conv.reshape(kkc, c_out).T.astype(compute_dtype))

    cparams = pltpu.CompilerParams(
        dimension_semantics=("parallel",),        # megacore sharding on v7x
        vmem_limit_bytes=32 * 1024 * 1024)        # safe on v5e/v6e/v7x

    # ---- phase 1: ReLU + conv (one matmul per tile) + per-tile BN partial sums.
    y_raw, tile_sum, tile_sq = pl.pallas_call(
        _conv_stats_kernel,
        grid=(num_tiles,),
        in_specs=[
            pl.BlockSpec((kkc_pad, tm), lambda i: (0, i)),
            pl.BlockSpec((c_out, kkc_pad), lambda i: (0, 0)),
        ],
        out_specs=(
            pl.BlockSpec((c_out, tm), lambda i: (0, i)),
            pl.BlockSpec((1, c_out, 1), lambda i: (i, 0, 0)),
            pl.BlockSpec((1, c_out, 1), lambda i: (i, 0, 0)),
        ),
        out_shape=(
            jax.ShapeDtypeStruct((c_out, m_pad), jnp.float32),
            jax.ShapeDtypeStruct((num_tiles, c_out, 1), jnp.float32),
            jax.ShapeDtypeStruct((num_tiles, c_out, 1), jnp.float32),
        ),
        compiler_params=cparams,
    )(patches_t, w_t)

    # ---- finalize batch statistics -> per-channel scale / shift (in Pallas).
    gamma_col = gamma.reshape(c_out, 1).astype(jnp.float32)
    beta_col = beta.reshape(c_out, 1).astype(jnp.float32)
    scale, shift = pl.pallas_call(
        functools.partial(_bn_finalize_kernel, num_tiles=num_tiles,
                          inv_m=1.0 / m, eps=eps),
        in_specs=[pl.BlockSpec(memory_space=pltpu.MemorySpace.VMEM)] * 4,
        out_specs=(pl.BlockSpec(memory_space=pltpu.MemorySpace.VMEM),) * 2,
        out_shape=(jax.ShapeDtypeStruct((c_out, 1), jnp.float32),) * 2,
    )(tile_sum, tile_sq, gamma_col, beta_col)

    # ---- phase 2: lane-dense per-channel FMA, normalized in place over y_raw.
    out_cm = pl.pallas_call(
        _bn_apply_kernel,
        grid=(num_tiles,),
        in_specs=[
            pl.BlockSpec((c_out, tm), lambda i: (0, i)),
            pl.BlockSpec((c_out, 1), lambda i: (0, 0)),
            pl.BlockSpec((c_out, 1), lambda i: (0, 0)),
        ],
        out_specs=pl.BlockSpec((c_out, tm), lambda i: (0, i)),
        out_shape=jax.ShapeDtypeStruct((c_out, m_pad), jnp.float32),
        input_output_aliases={0: 0},
        compiler_params=cparams,
    )(y_raw, scale, shift)

    # ---- layout plumbing back to NCHW.
    out = out_cm[:, :m].reshape(c_out, n, h_out, w_out)
    return jnp.transpose(out, (1, 0, 2, 3))


def _reference(x_nchw, weight, gamma, beta, *, stride, padding, dilation,
               output_padding, eps=1e-5):
    """Pure-JAX reference (XLA conv) for a correctness check."""
    c_in, c_out, k, _ = weight.shape
    s, p, d, op = stride, padding, dilation, output_padding
    pad_lo, pad_hi = d * (k - 1) - p, d * (k - 1) - p + op
    w_oihw = jnp.transpose(weight[:, :, ::-1, ::-1], (1, 0, 2, 3))
    y = jax.lax.conv_general_dilated(
        jnp.maximum(x_nchw, 0.0), w_oihw,
        window_strides=(1, 1),
        padding=[(pad_lo, pad_hi), (pad_lo, pad_hi)],
        lhs_dilation=(s, s), rhs_dilation=(d, d),
        dimension_numbers=("NCHW", "OIHW", "NCHW"))
    mean = jnp.mean(y, axis=(0, 2, 3), keepdims=True)
    var = jnp.mean((y - mean) ** 2, axis=(0, 2, 3), keepdims=True)
    g = gamma.reshape(1, c_out, 1, 1)
    b = beta.reshape(1, c_out, 1, 1)
    return (y - mean) * jax.lax.rsqrt(var + eps) * g + b


if __name__ == "__main__":
    # Module config: ReLUUpConvBN(C_in=4, C_out=8, kernel_size=3, stride=2,
    #                             padding=1, dilation=1, output_padding=1, affine=True)
    N, C_IN, C_OUT, H, W, K = 2, 4, 8, 16, 16, 3
    STRIDE, PAD, DIL, OUT_PAD = 2, 1, 1, 1

    key = jax.random.PRNGKey(0)
    key_x, key_w = jax.random.split(key)
    x = jax.random.normal(key_x, (N, C_IN, H, W), jnp.float32)
    # ConvTranspose2d weight layout: [C_in, C_out, kH, kW]; bias=False (affine=True).
    weight = jax.random.normal(key_w, (C_IN, C_OUT, K, K), jnp.float32) * 0.1
    gamma = jnp.ones((C_OUT,), jnp.float32)     # BatchNorm2d default init
    beta = jnp.zeros((C_OUT,), jnp.float32)

    out = relu_upconv_bn(x, weight, gamma, beta, stride=STRIDE, padding=PAD,
                         dilation=DIL, output_padding=OUT_PAD)
    out = jax.block_until_ready(out)

    expected_shape = (N, C_OUT,
                      (H - 1) * STRIDE - 2 * PAD + DIL * (K - 1) + OUT_PAD + 1,
                      (W - 1) * STRIDE - 2 * PAD + DIL * (K - 1) + OUT_PAD + 1)
    assert out.shape == expected_shape, (out.shape, expected_shape)

    ref = _reference(x, weight, gamma, beta, stride=STRIDE, padding=PAD,
                     dilation=DIL, output_padding=OUT_PAD)
    max_err = float(jnp.max(jnp.abs(out - ref)))
    assert jnp.allclose(out, ref, atol=2e-3, rtol=2e-3), max_err

    print("KERNEL_OK")
</pallas_src>

<mosaic_0001>
module attributes {stable_mosaic.version = 11 : i64} {
  func.func @_bn_finalize_kernel(%arg0: memref<4x8x1xf32, #tpu.memory_space<vmem>>, %arg1: memref<4x8x1xf32, #tpu.memory_space<vmem>>, %arg2: memref<8x1xf32, #tpu.memory_space<vmem>>, %arg3: memref<8x1xf32, #tpu.memory_space<vmem>>, %arg4: memref<8x1xf32, #tpu.memory_space<vmem>>, %arg5: memref<8x1xf32, #tpu.memory_space<vmem>>) attributes {dimension_semantics = [], scalar_prefetch = 0 : i64, scratch_operands = 0 : i64, tpu.core_type = #tpu.core_type<tc>} {
    %c0 = arith.constant 0 : index
    %c0_0 = arith.constant 0 : index
    %c0_1 = arith.constant 0 : index
    %0 = vector.load %arg0[%c0, %c0_0, %c0_1] : memref<4x8x1xf32, #tpu.memory_space<vmem>>, vector<1x8x1xf32>
    %1 = vector.shape_cast %0 : vector<1x8x1xf32> to vector<8x1xf32>
    %c0_2 = arith.constant 0 : index
    %c0_3 = arith.constant 0 : index
    %c0_4 = arith.constant 0 : index
    %2 = vector.load %arg1[%c0_2, %c0_3, %c0_4] : memref<4x8x1xf32, #tpu.memory_space<vmem>>, vector<1x8x1xf32>
    %3 = vector.shape_cast %2 : vector<1x8x1xf32> to vector<8x1xf32>
    %c1 = arith.constant 1 : index
    %c0_5 = arith.constant 0 : index
    %c0_6 = arith.constant 0 : index
    %4 = vector.load %arg0[%c1, %c0_5, %c0_6] : memref<4x8x1xf32, #tpu.memory_space<vmem>>, vector<1x8x1xf32>
    %5 = vector.shape_cast %4 : vector<1x8x1xf32> to vector<8x1xf32>
    %6 = arith.addf %1, %5 : vector<8x1xf32>
    %c1_7 = arith.constant 1 : index
    %c0_8 = arith.constant 0 : index
    %c0_9 = arith.constant 0 : index
    %7 = vector.load %arg1[%c1_7, %c0_8, %c0_9] : memref<4x8x1xf32, #tpu.memory_space<vmem>>, vector<1x8x1xf32>
    %8 = vector.shape_cast %7 : vector<1x8x1xf32> to vector<8x1xf32>
    %9 = arith.addf %3, %8 : vector<8x1xf32>
    %c2 = arith.constant 2 : index
    %c0_10 = arith.constant 0 : index
    %c0_11 = arith.constant 0 : index
    %10 = vector.load %arg0[%c2, %c0_10, %c0_11] : memref<4x8x1xf32, #tpu.memory_space<vmem>>, vector<1x8x1xf32>
    %11 = vector.shape_cast %10 : vector<1x8x1xf32> to vector<8x1xf32>
    %12 = arith.addf %6, %11 : vector<8x1xf32>
    %c2_12 = arith.constant 2 : index
    %c0_13 = arith.constant 0 : index
    %c0_14 = arith.constant 0 : index
    %13 = vector.load %arg1[%c2_12, %c0_13, %c0_14] : memref<4x8x1xf32, #tpu.memory_space<vmem>>, vector<1x8x1xf32>
    %14 = vector.shape_cast %13 : vector<1x8x1xf32> to vector<8x1xf32>
    %15 = arith.addf %9, %14 : vector<8x1xf32>
    %c3 = arith.constant 3 : index
    %c0_15 = arith.constant 0 : index
    %c0_16 = arith.constant 0 : index
    %16 = vector.load %arg0[%c3, %c0_15, %c0_16] : memref<4x8x1xf32, #tpu.memory_space<vmem>>, vector<1x8x1xf32>
    %17 = vector.shape_cast %16 : vector<1x8x1xf32> to vector<8x1xf32>
    %18 = arith.addf %12, %17 : vector<8x1xf32>
    %c3_17 = arith.constant 3 : index
    %c0_18 = arith.constant 0 : index
    %c0_19 = arith.constant 0 : index
    %19 = vector.load %arg1[%c3_17, %c0_18, %c0_19] : memref<4x8x1xf32, #tpu.memory_space<vmem>>, vector<1x8x1xf32>
    %20 = vector.shape_cast %19 : vector<1x8x1xf32> to vector<8x1xf32>
    %21 = arith.addf %15, %20 : vector<8x1xf32>
    %cst = arith.constant 4.8828125E-4 : f32
    %22 = vector.broadcast %cst : f32 to vector<8x1xf32>
    %23 = arith.mulf %18, %22 : vector<8x1xf32>
    %cst_20 = arith.constant 4.8828125E-4 : f32
    %24 = vector.broadcast %cst_20 : f32 to vector<8x1xf32>
    %25 = arith.mulf %21, %24 : vector<8x1xf32>
    %26 = arith.mulf %23, %23 : vector<8x1xf32>
    %27 = arith.subf %25, %26 : vector<8x1xf32>
    %cst_21 = arith.constant 0.000000e+00 : f32
    %28 = vector.broadcast %cst_21 : f32 to vector<8x1xf32>
    %29 = arith.maximumf %27, %28 : vector<8x1xf32>
    %c0_22 = arith.constant 0 : index
    %c0_23 = arith.constant 0 : index
    %30 = vector.load %arg2[%c0_22, %c0_23] : memref<8x1xf32, #tpu.memory_space<vmem>>, vector<8x1xf32>
    %cst_24 = arith.constant 9.99999974E-6 : f32
    %31 = vector.broadcast %cst_24 : f32 to vector<8x1xf32>
    %32 = arith.addf %29, %31 : vector<8x1xf32>
    %33 = math.rsqrt %32 : vector<8x1xf32>
    %34 = arith.mulf %30, %33 : vector<8x1xf32>
    %c0_25 = arith.constant 0 : index
    %c0_26 = arith.constant 0 : index
    %35 = vector.load %arg4[%c0_25, %c0_26] : memref<8x1xf32, #tpu.memory_space<vmem>>, vector<8x1xf32>
    tpu.vector_store %arg4[%c0_25, %c0_26], %34 {strides = array<i32>} : memref<8x1xf32, #tpu.memory_space<vmem>>, vector<8x1xf32>,
    %c0_27 = arith.constant 0 : index
    %c0_28 = arith.constant 0 : index
    %36 = vector.load %arg3[%c0_27, %c0_28] : memref<8x1xf32, #tpu.memory_space<vmem>>, vector<8x1xf32>
    %37 = arith.mulf %23, %34 : vector<8x1xf32>
    %38 = arith.subf %36, %37 : vector<8x1xf32>
    %c0_29 = arith.constant 0 : index
    %c0_30 = arith.constant 0 : index
    %39 = vector.load %arg5[%c0_29, %c0_30] : memref<8x1xf32, #tpu.memory_space<vmem>>, vector<8x1xf32>
    tpu.vector_store %arg5[%c0_29, %c0_30], %38 {strides = array<i32>} : memref<8x1xf32, #tpu.memory_space<vmem>>, vector<8x1xf32>,
    return
  }
}

module attributes {stable_mosaic.version = 11 : i64} {
  func.func @_conv_stats_kernel(%arg0: i32, %arg1: memref<40x512xf32, #tpu.memory_space<vmem>>, %arg2: memref<8x40xf32, #tpu.memory_space<vmem>>, %arg3: memref<8x512xf32, #tpu.memory_space<vmem>>, %arg4: memref<1x8x1xf32, #tpu.memory_space<vmem>>, %arg5: memref<1x8x1xf32, #tpu.memory_space<vmem>>) attributes {dimension_semantics = [#tpu.dimension_semantics<parallel>], iteration_bounds = array<i64: 4>, scalar_prefetch = 0 : i64, scratch_operands = 0 : i64, tpu.core_type = #tpu.core_type<tc>, window_params = [{transform_indices = @transform_0, window_bounds = array<i64: 40, 512>}, {pipeline_mode = #tpu.pipeline_mode<synchronous>, transform_indices = @transform_1, window_bounds = array<i64: 8, 40>}, {transform_indices = @transform_2, window_bounds = array<i64: 8, 512>}, {transform_indices = @transform_3, window_bounds = array<i64: 1, 8, 1>}, {transform_indices = @transform_4, window_bounds = array<i64: 1, 8, 1>}]} {
    %c0 = arith.constant 0 : index
    %c0_0 = arith.constant 0 : index
    %0 = vector.load %arg1[%c0, %c0_0] : memref<40x512xf32, #tpu.memory_space<vmem>>, vector<40x512xf32>
    %cst = arith.constant 0.000000e+00 : f32
    %1 = vector.broadcast %cst : f32 to vector<40x512xf32>
    %2 = arith.maximumf %0, %1 : vector<40x512xf32>
    %c0_1 = arith.constant 0 : index
    %c0_2 = arith.constant 0 : index
    %3 = vector.load %arg2[%c0_1, %c0_2] : memref<8x40xf32, #tpu.memory_space<vmem>>, vector<8x40xf32>
    %cst_3 = arith.constant dense<0.000000e+00> : vector<8x512xf32>
    %4 = tpu.matmul %3, %2, %cst_3 {dimension_numbers = #tpu.dot_dimension_numbers<[1], [0], [0], [1], [0, 0, 1, 1], [], []>} : vector<8x40xf32>, vector<40x512xf32>, vector<8x512xf32> -> vector<8x512xf32>
    %cst_4 = arith.constant dense<0.000000e+00> : vector<8xf32>
    %5 = vector.multi_reduction <add>, %4, %cst_4 [1] : vector<8x512xf32> to vector<8xf32>
    %6 = vector.shape_cast %5 : vector<8xf32> to vector<8x1xf32>
    %c0_5 = arith.constant 0 : index
    %c0_6 = arith.constant 0 : index
    %c0_7 = arith.constant 0 : index
    %7 = vector.load %arg4[%c0_5, %c0_6, %c0_7] : memref<1x8x1xf32, #tpu.memory_space<vmem>>, vector<1x8x1xf32>
    %8 = vector.shape_cast %7 : vector<1x8x1xf32> to vector<8x1xf32>
    %9 = vector.shape_cast %6 : vector<8x1xf32> to vector<1x8x1xf32>
    tpu.vector_store %arg4[%c0_5, %c0_6, %c0_7], %9 {strides = array<i32>} : memref<1x8x1xf32, #tpu.memory_space<vmem>>, vector<1x8x1xf32>,
    %10 = arith.mulf %4, %4 : vector<8x512xf32>
    %cst_8 = arith.constant dense<0.000000e+00> : vector<8xf32>
    %11 = vector.multi_reduction <add>, %10, %cst_8 [1] : vector<8x512xf32> to vector<8xf32>
    %12 = vector.shape_cast %11 : vector<8xf32> to vector<8x1xf32>
    %c0_9 = arith.constant 0 : index
    %c0_10 = arith.constant 0 : index
    %c0_11 = arith.constant 0 : index
    %13 = vector.load %arg5[%c0_9, %c0_10, %c0_11] : memref<1x8x1xf32, #tpu.memory_space<vmem>>, vector<1x8x1xf32>
    %14 = vector.shape_cast %13 : vector<1x8x1xf32> to vector<8x1xf32>
    %15 = vector.shape_cast %12 : vector<8x1xf32> to vector<1x8x1xf32>
    tpu.vector_store %arg5[%c0_9, %c0_10, %c0_11], %15 {strides = array<i32>} : memref<1x8x1xf32, #tpu.memory_space<vmem>>, vector<1x8x1xf32>,
    %c0_12 = arith.constant 0 : index
    %c0_13 = arith.constant 0 : index
    %16 = vector.load %arg3[%c0_12, %c0_13] : memref<8x512xf32, #tpu.memory_space<vmem>>, vector<8x512xf32>
    tpu.vector_store %arg3[%c0_12, %c0_13], %4 {strides = array<i32>} : memref<8x512xf32, #tpu.memory_space<vmem>>, vector<8x512xf32>,
    return
  }
  func.func @transform_0(%arg0: i32) -> (i32, i32) {
    %c0_i32 = arith.constant 0 : i32
    %c0_i32_0 = arith.constant 0 : i32
    return %c0_i32, %arg0 : i32, i32
  }
  func.func @transform_1(%arg0: i32) -> (i32, i32) {
    %c0_i32 = arith.constant 0 : i32
    %c0_i32_0 = arith.constant 0 : i32
    %c0_i32_1 = arith.constant 0 : i32
    return %c0_i32, %c0_i32_0 : i32, i32
  }
  func.func @transform_2(%arg0: i32) -> (i32, i32) {
    %c0_i32 = arith.constant 0 : i32
    %c0_i32_0 = arith.constant 0 : i32
    return %c0_i32, %arg0 : i32, i32
  }
  func.func @transform_3(%arg0: i32) -> (i32, i32, i32) {
    %c0_i32 = arith.constant 0 : i32
    %c0_i32_0 = arith.constant 0 : i32
    %c0_i32_1 = arith.constant 0 : i32
    return %arg0, %c0_i32, %c0_i32_0 : i32, i32, i32
  }
  func.func @transform_4(%arg0: i32) -> (i32, i32, i32) {
    %c0_i32 = arith.constant 0 : i32
    %c0_i32_0 = arith.constant 0 : i32
    %c0_i32_1 = arith.constant 0 : i32
    return %arg0, %c0_i32, %c0_i32_0 : i32, i32, i32
  }
}

module attributes {stable_mosaic.version = 11 : i64} {
  func.func @_bn_apply_kernel(%arg0: i32, %arg1: memref<8x512xf32, #tpu.memory_space<vmem>>, %arg2: memref<8x1xf32, #tpu.memory_space<vmem>>, %arg3: memref<8x1xf32, #tpu.memory_space<vmem>>, %arg4: memref<8x512xf32, #tpu.memory_space<vmem>>) attributes {dimension_semantics = [#tpu.dimension_semantics<parallel>], iteration_bounds = array<i64: 4>, scalar_prefetch = 0 : i64, scratch_operands = 0 : i64, tpu.core_type = #tpu.core_type<tc>, window_params = [{transform_indices = @transform_0, window_bounds = array<i64: 8, 512>}, {pipeline_mode = #tpu.pipeline_mode<synchronous>, transform_indices = @transform_1, window_bounds = array<i64: 8, 1>}, {pipeline_mode = #tpu.pipeline_mode<synchronous>, transform_indices = @transform_2, window_bounds = array<i64: 8, 1>}, {transform_indices = @transform_3, window_bounds = array<i64: 8, 512>}]} {
    %c0 = arith.constant 0 : index
    %c0_0 = arith.constant 0 : index
    %0 = vector.load %arg1[%c0, %c0_0] : memref<8x512xf32, #tpu.memory_space<vmem>>, vector<8x512xf32>
    %c0_1 = arith.constant 0 : index
    %c0_2 = arith.constant 0 : index
    %1 = vector.load %arg2[%c0_1, %c0_2] : memref<8x1xf32, #tpu.memory_space<vmem>>, vector<8x1xf32>
    %2 = vector.broadcast %1 : vector<8x1xf32> to vector<8x512xf32>
    %3 = arith.mulf %0, %2 : vector<8x512xf32>
    %c0_3 = arith.constant 0 : index
    %c0_4 = arith.constant 0 : index
    %4 = vector.load %arg3[%c0_3, %c0_4] : memref<8x1xf32, #tpu.memory_space<vmem>>, vector<8x1xf32>
    %5 = vector.broadcast %4 : vector<8x1xf32> to vector<8x512xf32>
    %6 = arith.addf %3, %5 : vector<8x512xf32>
    %c0_5 = arith.constant 0 : index
    %c0_6 = arith.constant 0 : index
    %7 = vector.load %arg4[%c0_5, %c0_6] : memref<8x512xf32, #tpu.memory_space<vmem>>, vector<8x512xf32>
    tpu.vector_store %arg4[%c0_5, %c0_6], %6 {strides = array<i32>} : memref<8x512xf32, #tpu.memory_space<vmem>>, vector<8x512xf32>,
    return
  }
  func.func @transform_0(%arg0: i32) -> (i32, i32) {
    %c0_i32 = arith.constant 0 : i32
    %c0_i32_0 = arith.constant 0 : i32
    return %c0_i32, %arg0 : i32, i32
  }
  func.func @transform_1(%arg0: i32) -> (i32, i32) {
    %c0_i32 = arith.constant 0 : i32
    %c0_i32_0 = arith.constant 0 : i32
    %c0_i32_1 = arith.constant 0 : i32
    return %c0_i32, %c0_i32_0 : i32, i32
  }
  func.func @transform_2(%arg0: i32) -> (i32, i32) {
    %c0_i32 = arith.constant 0 : i32
    %c0_i32_0 = arith.constant 0 : i32
    %c0_i32_1 = arith.constant 0 : i32
    return %c0_i32, %c0_i32_0 : i32, i32
  }
  func.func @transform_3(%arg0: i32) -> (i32, i32) {
    %c0_i32 = arith.constant 0 : i32
    %c0_i32_0 = arith.constant 0 : i32
    return %c0_i32, %arg0 : i32, i32
  }
}

</mosaic_0001>

<bundles_post_ra>
// kernel: relu_upconv_bn.4
= control target key start
LH: loop header
LB: loop body
LE: loop exit
PB: predicated region body
PF: predicated region fallthrough
CT: control target
= control target key end

     0   :  { %vm48_vm0 = vcmask 7168   ;;  %s136_s0 = inlined_call_operand.vmem [shape: f32[4,8,1], index: 0, kind: input, shape index: {}]   ;;  %s137_s1 = inlined_call_operand.vmem [shape: f32[4,8,1], index: 1, kind: input, shape index: {}]   ;;  %s138_s2 = inlined_call_operand.vmem [shape: f32[8,1], index: 2, kind: input, shape index: {}]   ;;  %s139_s3 = inlined_call_operand.vmem [shape: f32[8,1], index: 3, kind: input, shape index: {}]   ;;  %s140_s4 = inlined_call_operand.vmem [shape: f32[8,1], index: 4, kind: output, shape index: {0}]   ;;  %s141_s5 = inlined_call_operand.vmem [shape: f32[8,1], index: 5, kind: output, shape index: {1}]  }
   0x1   :  { %v19_v0 = vld [vmem:[%s136_s0] sm:$0xff]  ;;  %v62_v2 = vld [vmem:[%s136_s0 + $0x8] sm:$0xff]  ;;  %v64_v5 = vld [vmem:[%s136_s0 + $0x10] sm:$0xff] }
   0x2   :  { %v20_v1 = vld [vmem:[%s137_s1] sm:$0xff]  ;;  %v23_v3 = vadd.f32 %v62_v2, %v19_v0  ;;  %v63_v4 = vld [vmem:[%s137_s1 + $0x8] sm:$0xff]  ;;  %v65_v6 = vld [vmem:[%s137_s1 + $0x10] sm:$0xff] }
   0x3   :  { %v26_v7 = vadd.f32 %v63_v4, %v20_v1  ;;  %v66_v8 = vld [vmem:[%s136_s0 + $0x18] sm:$0xff]  ;;  %v44_v20 = vld [vmem:[%s138_s2] sm:$0xff] }
   0x4   :  { %v29_v9 = vadd.f32 %v64_v5, %v23_v3  ;;  %v67_v10 = vld [vmem:[%s137_s1 + $0x18] sm:$0xff]  ;;  %v50_v23 = vld [vmem:[%s139_s3] sm:$0xff] }
   0x5   :  { %v32_v11 = vadd.f32 %v65_v6, %v26_v7 }
   0x6   :  { %v35_v12 = vadd.f32 %v66_v8, %v29_v9 }
   0x7   :  { %v38_v13 = vadd.f32 %v67_v10, %v32_v11 }
   0x8   :  { %v39_v14 = vmul.f32 0.00048828125, %v35_v12 }
   0x9   :  { %v40_v15 = vmul.f32 0.00048828125, %v38_v13 }
   0xa   :  { %v41_v16 = vmul.f32 %v39_v14, %v39_v14 }
   0xc   :  { %v42_v17 = vsub.f32 %v40_v15, %v41_v16 }
   0xe   :  { %v43_v18 = vmax.f32 %v42_v17, 0.0 }
  0x10   :  { %v45_v19 = vadd.f32 1e-05, %v43_v18 }
  0x12   :  { %68 = vrsqrt.f32 %v45_v19 }
  0x1c   :  { %v69_v21 = vpop.eup %68 }
  0x1d   :  { %v47_v22 = vmul.f32 %v69_v21, %v44_v20 }
  0x1f   :  { %49 = vst.msk [vmem:[%s140_s4] sm:$0xff] %vm48_vm0, %v47_v22  ;;  %v51_v24 = vmul.f32 %v47_v22, %v39_v14 }
  0x21   :  { %v52_v25 = vsub.f32 %v50_v23, %v51_v24 }
  0x23   :  { %53 = vst.msk [vmem:[%s141_s5] sm:$0xff] %vm48_vm0, %v52_v25 }

// kernel: relu_upconv_bn.3
= control target key start
LH: loop header
LB: loop body
LE: loop exit
PB: predicated region body
PF: predicated region fallthrough
CT: control target
= control target key end

     0   :  { %s720_s15 = smov 0   ;;  %s722_s16 = smov 0   ;;  %s850_s0 = inlined_call_operand.vmem [shape: f32[40,2048], index: 0, kind: input, shape index: {}]   ;;  %s851_s1 = inlined_call_operand.vmem [shape: f32[8,40], index: 1, kind: input, shape index: {}]   ;;  %s852_s2 = inlined_call_operand.vmem [shape: f32[8,2048], index: 2, kind: output, shape index: {0}]   ;;  %s853_s3 = inlined_call_operand.vmem [shape: f32[4,8,1], index: 3, kind: output, shape index: {1}]   ;;  %s854_s4 = inlined_call_operand.vmem [shape: f32[4,8,1], index: 4, kind: output, shape index: {2}]  }
   0x1   :  { %s724_s17 = smov 0  }
   0x2 LB: > { %s736_s18 = sadd.s32 4294967295, %s692_s17   ;;  %s739_s19 = sadd.s32 1, %s692_s17   ;;  %s692_s17 = sphi %s724_s17, %s857_s17   ;;  %s688_s16 = sphi %s722_s16, %s856_s16   ;;  %s684_s15 = sphi %s720_s15, %s855_s15  }
   0x3   : > { %s19_s20 = ssub.s32 %s692_s17, %s739_s19  ;;  %s22_s21 = sadd.s32 1, %s688_s16 }
   0x4   : > { %p20_p0 = scmp.eq.s32.totalorder %s19_s20, 0  ;;  %p29_p1 = scmp.ne.s32.totalorder %s688_s16, %s684_s15 }
   0x5   : > { %p30_p2 = scmp.eq.s32.totalorder %s692_s17, 0  ;;  %p614_p4 = scmp.ge.s32.totalorder %s692_s17, 4 }
   0x6   : > { %s748_s22 = scalar_select %p20_p0, %s688_s16, %s22_s21  }
   0x7   : > { %p31_p3 = por %p30_p2, %p29_p1  ;;  %157 = sbr.rel (%p614_p4) target bundleno = 29 (0x1d), region = 20 }
   0xe   : > { %160 = sbr.rel (!%p31_p3) target bundleno = 29 (0x1d), region = 24  ;;  %s162_s23 = sand.u32 (%p31_p3), 1, %s688_s16  }
   0xf   : > { %s626_s24 = sshll.u32 (%p31_p3), %s692_s17, 5  ;;  %s643_s25 = smul.u32 (%p31_p3), 160, %s162_s23 }
  0x10   : > { %s756_s28 = scalar_lea.vmem (%p31_p3), %s850_s0, %s626_s24 }
  0x11   : > { %v180_v0 = vld [vmem:[%s756_s28] sm:$0xff] (%p31_p3)  ;;  %v182_v1 = vld [vmem:[%s756_s28 + $0x8] sm:$0xff] (%p31_p3)  ;;  %v184_v2 = vld [vmem:[%s756_s28 + $0x10] sm:$0xff] (%p31_p3)  ;;  %s764_s29 = scalar_lea.vmem (%p31_p3), [#allocation2], %s643_s25 }
  0x12   : > { %v186_v3 = vld [vmem:[%s756_s28 + $0x18] sm:$0xff] (%p31_p3)  ;;  %v188_v4 = vld [vmem:[%s756_s28 + $0x80] sm:$0xff] (%p31_p3)  ;;  %v190_v5 = vld [vmem:[%s756_s28 + $0x88] sm:$0xff] (%p31_p3)  ;;  %181 = vst [vmem:[%s764_s29] sm:$0xff] (%p31_p3), %v180_v0 }
  0x13   : > { %183 = vst [vmem:[%s764_s29 + $0x8] sm:$0xff] (%p31_p3), %v182_v1  ;;  %185 = vst [vmem:[%s764_s29 + $0x10] sm:$0xff] (%p31_p3), %v184_v2  ;;  %v192_v6 = vld [vmem:[%s756_s28 + $0x90] sm:$0xff] (%p31_p3)  ;;  %v194_v7 = vld [vmem:[%s756_s28 + $0x98] sm:$0xff] (%p31_p3) }
  0x14   : > { %187 = vst [vmem:[%s764_s29 + $0x18] sm:$0xff] (%p31_p3), %v186_v3  ;;  %189 = vst [vmem:[%s764_s29 + $0x20] sm:$0xff] (%p31_p3), %v188_v4  ;;  %v196_v8 = vld [vmem:[%s756_s28 + $0x100] sm:$0xff] (%p31_p3)  ;;  %v198_v9 = vld [vmem:[%s756_s28 + $0x108] sm:$0xff] (%p31_p3) }
  0x15   : > { %191 = vst [vmem:[%s764_s29 + $0x28] sm:$0xff] %v190_v5  ;;  %193 = vst [vmem:[%s764_s29 + $0x30] sm:$0xff] %v192_v6  ;;  %v200_v10 = vld [vmem:[%s756_s28 + $0x110] sm:$0xff]  ;;  %v202_v11 = vld [vmem:[%s756_s28 + $0x118] sm:$0xff] }
  0x16   : > { %195 = vst [vmem:[%s764_s29 + $0x38] sm:$0xff] %v194_v7  ;;  %197 = vst [vmem:[%s764_s29 + $0x40] sm:$0xff] %v196_v8  ;;  %v204_v12 = vld [vmem:[%s756_s28 + $0x180] sm:$0xff]  ;;  %v206_v13 = vld [vmem:[%s756_s28 + $0x188] sm:$0xff] }
  0x17   : > { %199 = vst [vmem:[%s764_s29 + $0x48] sm:$0xff] %v198_v9  ;;  %201 = vst [vmem:[%s764_s29 + $0x50] sm:$0xff] %v200_v10  ;;  %v208_v14 = vld [vmem:[%s756_s28 + $0x190] sm:$0xff]  ;;  %v210_v15 = vld [vmem:[%s756_s28 + $0x198] sm:$0xff] }
  0x18   : > { %203 = vst [vmem:[%s764_s29 + $0x58] sm:$0xff] %v202_v11  ;;  %205 = vst [vmem:[%s764_s29 + $0x60] sm:$0xff] %v204_v12  ;;  %v212_v16 = vld [vmem:[%s756_s28 + $0x200] sm:$0xff]  ;;  %v214_v17 = vld [vmem:[%s756_s28 + $0x208] sm:$0xff] }
  0x19   : > { %207 = vst [vmem:[%s764_s29 + $0x68] sm:$0xff] %v206_v13  ;;  %209 = vst [vmem:[%s764_s29 + $0x70] sm:$0xff] %v208_v14  ;;  %v216_v18 = vld [vmem:[%s756_s28 + $0x210] sm:$0xff]  ;;  %v218_v19 = vld [vmem:[%s756_s28 + $0x218] sm:$0xff] }
  0x1a   : > { %211 = vst [vmem:[%s764_s29 + $0x78] sm:$0xff] %v210_v15  ;;  %213 = vst [vmem:[%s764_s29 + $0x80] sm:$0xff] %v212_v16 }
  0x1b   : > { %215 = vst [vmem:[%s764_s29 + $0x88] sm:$0xff] %v214_v17  ;;  %217 = vst [vmem:[%s764_s29 + $0x90] sm:$0xff] %v216_v18 }
  0x1c   : > { %219 = vst [vmem:[%s764_s29 + $0x98] sm:$0xff] %v218_v19 }
  0x1d PF: > { %p617_p5 = scmp.ge.s32.totalorder %s692_s17, 1  ;;  %p224_p6 = scmp.lt.s32.totalorder %s692_s17, 5 }
  0x1f   : > { %p225_p7 = pnand %p617_p5, %p224_p6 }
  0x20   : > { %s231_s30 = sand.u32 (!%p225_p7), 1, %s684_s15   ;;  %v694_v20 = vmov (!%p225_p7), 0.0   ;;  %v319_v5 = vld [vmem:[%s851_s1] sm:$0xff] (!%p225_p7)  ;;  %vm320_vm0 = vcmask (!%p225_p7), 326656   ;;  %s618_s9 = sshll.u32 (!%p225_p7), %s736_s18, 2  ;;  %vm471_vm1 = vcmask (!%p225_p7), 7168  }
  0x21   : > { %228 = sbr.rel (%p225_p7) target bundleno = 419 (0x1a3), region = 47  ;;  %388 = vmatprep.mubr.f32.mxu0 (!%p225_p7), %v694_v20  ;;  %459 = vmatprep.mubr.f32.mxu1 (!%p225_p7), %v694_v20  ;;  %p266_p8 = scmp.lt.s32.totalorder (!%p225_p7), %s618_s9, 15 }
  0x22   : > { %s644_s5 = smul.u32 (!%p225_p7), 160, %s231_s30  ;;  %p271_p9 = scmp.lt.s32.totalorder (!%p225_p7), %s736_s18, 3 }
  0x24   : > { %s803_s6 = scalar_lea.vmem (!%p225_p7), [#allocation2], %s644_s5 }
  0x25   : > { %v280_v21 = vld [vmem:[%s803_s6 + $0x8] sm:$0xff] (!%p225_p7)  ;;  %v279_v23 = vld [vmem:[%s803_s6] sm:$0xff] (!%p225_p7)  ;;  %v282_v28 = vld [vmem:[%s803_s6 + $0x18] sm:$0xff] (!%p225_p7) }
  0x26   : > { %v284_v22 = vld [vmem:[%s803_s6 + $0x28] sm:$0xff] (!%p225_p7)  ;;  %v300_v24 = vmax.f32 (!%p225_p7), %v280_v21, 0.0  ;;  %v283_v26 = vld [vmem:[%s803_s6 + $0x20] sm:$0xff] (!%p225_p7)  ;;  %v299_v27 = vmax.f32 (!%p225_p7), %v279_v23, 0.0  ;;  %v286_v29 = vld [vmem:[%s803_s6 + $0x38] sm:$0xff] (!%p225_p7)  ;;  %v302_v31 = vmax.f32 (!%p225_p7), %v282_v28, 0.0 }
  0x27   : > { %v304_v25 = vmax.f32 (!%p225_p7), %v284_v22, 0.0  ;;  %v303_v30 = vmax.f32 (!%p225_p7), %v283_v26, 0.0  ;;  %v306_v32 = vmax.f32 (!%p225_p7), %v286_v29, 0.0  ;;  %v281_v33 = vld [vmem:[%s803_s6 + $0x10] sm:$0xff] (!%p225_p7)  ;;  %v288_v35 = vld [vmem:[%s803_s6 + $0x48] sm:$0xff] (!%p225_p7)  ;;  %v287_v41 = vld [vmem:[%s803_s6 + $0x40] sm:$0xff] (!%p225_p7) }
  0x28   : > { %v285_v34 = vld [vmem:[%s803_s6 + $0x30] sm:$0xff]  ;;  %v301_v37 = vmax.f32 %v281_v33, 0.0  ;;  %v292_v39 = vld [vmem:[%s803_s6 + $0x68] sm:$0xff]  ;;  %v308_v40 = vmax.f32 %v288_v35, 0.0  ;;  %v291_v42 = vld [vmem:[%s803_s6 + $0x60] sm:$0xff]  ;;  %v307_v46 = vmax.f32 %v287_v41, 0.0 }
  0x29   : > { %v627_v36 = vpack.c.bf16 %v304_v25, %v300_v24  ;;  %v305_v38 = vmax.f32 %v285_v34, 0.0  ;;  %v629_v43 = vpack.c.bf16 %v303_v30, %v299_v27  ;;  %v635_v44 = vpack.c.bf16 %v306_v32, %v302_v31  ;;  %v290_v47 = vld [vmem:[%s803_s6 + $0x58] sm:$0xff]  ;;  %v289_v49 = vld [vmem:[%s803_s6 + $0x50] sm:$0xff]  ;;  %v296_v55 = vld [vmem:[%s803_s6 + $0x88] sm:$0xff]  ;;  %s859_s9 = smov (!%p266_p8, %s618_s9), 15  ;;  %s861_s18 = smov (!%p271_p9, %s736_s18), 3 }
  0x2a   : > { %v312_v45 = vmax.f32 %v292_v39, 0.0  ;;  %v294_v48 = vld [vmem:[%s803_s6 + $0x78] sm:$0xff]  ;;  %v311_v51 = vmax.f32 %v291_v42, 0.0  ;;  %v310_v52 = vmax.f32 %v290_v47, 0.0  ;;  %v293_v54 = vld [vmem:[%s803_s6 + $0x70] sm:$0xff]  ;;  %v309_v57 = vmax.f32 %v289_v49, 0.0 }
  0x2b   : > { %628 = vmatprep.subr.bf16.mxu0 %v627_v36  ;;  %v637_v50 = vpack.c.bf16 %v305_v38, %v301_v37  ;;  %v314_v53 = vmax.f32 %v294_v48, 0.0  ;;  %636 = vmatprep.subr.bf16.mxu1 %v635_v44  ;;  %v313_v58 = vmax.f32 %v293_v54, 0.0  ;;  %v298_v59 = vld [vmem:[%s803_s6 + $0x98] sm:$0xff]  ;;  %v316_v62 = vmax.f32 %v296_v55, 0.0  ;;  %v295_v63 = vld [vmem:[%s803_s6 + $0x80] sm:$0xff]  ;;  %v297_v2 = vld [vmem:[%s803_s6 + $0x90] sm:$0xff] }
  0x2c   : > { %630 = vmatpush1.bf16.msra.mxu0 %v629_v43  ;;  %v631_v56 = vpack.c.bf16 %v312_v45, %v308_v40  ;;  %v633_v60 = vpack.c.bf16 %v311_v51, %v307_v46  ;;  %v318_v1 = vmax.f32 %v298_v59, 0.0  ;;  %v315_v3 = vmax.f32 %v295_v63, 0.0  ;;  %s619_s10 = sshll.u32 %s859_s9, 3  ;;  %s620_s14 = sshll.u32 %s861_s18, 3 }
  0x2d   : > { %638 = vmatpush1.bf16.msra.mxu1 %v637_v50  ;;  %v639_v61 = vpack.c.bf16 %v314_v53, %v310_v52  ;;  %v641_v0 = vpack.c.bf16 %v313_v58, %v309_v57  ;;  %v317_v4 = vmax.f32 %v297_v2, 0.0  ;;  %s269_s13 = scalar_lea.vmem %s852_s2, %s619_s10  ;;  %s274_s20 = scalar_lea.vmem %s853_s3, %s620_s14 }
  0x2e   : > { %632 = vmatprep.subr.bf16.mxu0 %v631_v56  ;;  %s278_s24 = scalar_lea.vmem %s854_s4, %s620_s14 }
  0x2f   : > { %640 = vmatprep.subr.bf16.mxu1 %v639_v61 }
  0x30   : > { %634 = vmatpush1.bf16.msra.mxu0 %v633_v60 }
  0x31   : > { %642 = vmatpush1.bf16.msra.mxu1 %v641_v0  ;;  %332 = vmatprep.subr.mxu0 %v316_v62 }
  0x32   : > { %403 = vmatprep.subr.mxu1 %v318_v1 }
  0x34   : > { %333 = vmatpush1.msra.mxu0 %v315_v3 }
  0x35   : > { %622 = vmatmul.mubr.msk.f32.vlgmr.msra.gmra.mrb[0].mxu0 %vm320_vm0, %v319_v5  ;;  %404 = vmatpush1.msra.mxu1 %v317_v4 }
  0x36   : > { %623 = vmatmul.mubr.msk.f32.vlgmr.msra.gmra.mrb[0].mxu1 %vm320_vm0, %v319_v5 }
 0x108   : > { %v390_v6 = vpop.f32.mrb[0].mxu0 }
 0x109   : > { %v473_v7 = vmul.f32 %v390_v6, %v390_v6  ;;  %483 = vst [vmem:[%s269_s13] sm:$0xff] %v390_v6  ;;  %v392_v8 = vpop.f32.mrb[1].mxu0  ;;  %v461_v9 = vpop.f32.mrb[0].mxu1 }
 0x10a   : > { %v466_v10 = vadd.f32 %v392_v8, %v390_v6  ;;  %v474_v11 = vmul.f32 %v392_v8, %v392_v8  ;;  %484 = vst [vmem:[%s269_s13 + $0x8] sm:$0xff] %v392_v8  ;;  %v475_v12 = vmul.f32 %v461_v9, %v461_v9  ;;  %485 = vst [vmem:[%s269_s13 + $0x10] sm:$0xff] %v461_v9  ;;  %v463_v13 = vpop.f32.mrb[1].mxu1 }
 0x10b   : > { %486 = vst [vmem:[%s269_s13 + $0x18] sm:$0xff] %v463_v13  ;;  %v476_v16 = vmul.f32 %v463_v13, %v463_v13 }
 0x10c   : > { %v477_v14 = vadd.f32 %v474_v11, %v473_v7  ;;  %v467_v15 = vadd.f32 %v466_v10, %v461_v9 }
 0x10e   : > { %v468_v17 = vadd.f32 %v467_v15, %v463_v13  ;;  %v478_v18 = vadd.f32 %v477_v14, %v475_v12 }
 0x110   : > { %469 = vadd.xlane.f32.xlu0 %v468_v17  ;;  %v479_v19 = vadd.f32 %v478_v18, %v476_v16 }
 0x114   : > { %480 = vadd.xlane.f32.xlu0 %v479_v19 }
 0x19d   : > { %v470_v20 = vpop.xlane.xlu0 %469 }
 0x19e   : > { %472 = vst.msk [vmem:[%s274_s20] sm:$0xff] %vm471_vm1, %v470_v20 }
 0x1a1   : > { %v481_v21 = vpop.xlane.xlu0 %480 }
 0x1a2   : > { %482 = vst.msk [vmem:[%s278_s24] sm:$0xff] %vm471_vm1, %v481_v21 }
 0x1a3 PF: > { %p12_p10 = scmp.ge.s32.totalorder %s739_s19, 6   ;;  %s855_s15 = smov %s688_s16 }
 0x1a4   : > { %s856_s16 = smov %s748_s22  ;;  %s857_s17 = smov %s739_s19 }
 0x1a5   :  { %14 = sbr.rel (!%p12_p10) target bundleno = 2 (0x2), region = 110 }

// kernel: relu_upconv_bn.5
= control target key start
LH: loop header
LB: loop body
LE: loop exit
PB: predicated region body
PF: predicated region fallthrough
CT: control target
= control target key end

     0   :  { %s308_s12 = smov 0   ;;  %s331_s0 = inlined_call_operand.vmem [shape: f32[8,2048], index: 0, kind: input, shape index: {}, may-alias: {0,3}]   ;;  %s332_s1 = inlined_call_operand.vmem [shape: f32[8,1], index: 1, kind: input, shape index: {}]   ;;  %s333_s2 = inlined_call_operand.vmem [shape: f32[8,1], index: 2, kind: input, shape index: {}]   ;;  %s334_s3 = inlined_call_operand.vmem [shape: f32[8,2048], index: 3, kind: output, shape index: {}, may-alias: {0,3}]  }
   0x1 LB: > { %s258_s13 = sadd.s32 4294967295, %s285_s12   ;;  %p262_p0 = scmp.ge.s32.totalorder %s285_s12, 1  ;;  %s285_s12 = sphi %s308_s12, %s13_s12  }
   0x2   : > { %p138_p1 = scmp.lt.s32.totalorder %s285_s12, 5 }
   0x4   : > { %p139_p2 = pnand %p262_p0, %p138_p1 }
   0x5   : > { %v178_v0 = vld [vmem:[%s332_s1] sm:$0xff] (!%p139_p2)  ;;  %v287_v1 = vmov (!%p139_p2), 0   ;;  %s263_s18 = sshll.u32 (!%p139_p2), %s258_s13, 2 }
   0x6   : > { %142 = sbr.rel (%p139_p2) target bundleno = 143 (0x8f), region = 32  ;;  %278 = vset.pattern.permute.xlu0 (!%p139_p2), %v287_v1  ;;  %v188_v2 = vld [vmem:[%s333_s2] sm:$0xff] (!%p139_p2)  ;;  %p163_p3 = scmp.lt.s32.totalorder (!%p139_p2), %s263_s18, 15 }
   0x7   : > { %181 = vperm.xlu0 (!%p139_p2), %278, %v178_v0  }
   0xb   : > { %191 = vperm.xlu0 (!%p139_p2), %278, %v188_v2  }
   0xd   : > { %s336_s18 = smov (!%p163_p3, %s263_s18), 15 }
   0xe   : > { %s264_s19 = sshll.u32 %s336_s18, 3 }
   0xf   : > { %s166_s22 = scalar_lea.vmem %s331_s0, %s264_s19  ;;  %s172_s25 = scalar_lea.vmem %s334_s3, %s264_s19 }
  0x10   : > { %v174_v3 = vld [vmem:[%s166_s22] sm:$0xff]  ;;  %v175_v5 = vld [vmem:[%s166_s22 + $0x8] sm:$0xff]  ;;  %v176_v6 = vld [vmem:[%s166_s22 + $0x10] sm:$0xff] }
  0x11   : > { %v177_v7 = vld [vmem:[%s166_s22 + $0x18] sm:$0xff] }
  0x86   : > { %v182_v4 = vpop.permute.xlu0 %181 }
  0x87   : > { %v184_v8 = vmul.f32 %v182_v4, %v174_v3  ;;  %v185_v9 = vmul.f32 %v182_v4, %v175_v5  ;;  %v186_v10 = vmul.f32 %v182_v4, %v176_v6  ;;  %v187_v11 = vmul.f32 %v182_v4, %v177_v7 }
  0x8a   : > { %v192_v12 = vpop.permute.xlu0 %191 }
  0x8b   : > { %v194_v13 = vadd.f32 %v192_v12, %v184_v8  ;;  %v195_v14 = vadd.f32 %v192_v12, %v185_v9  ;;  %v196_v15 = vadd.f32 %v192_v12, %v186_v10  ;;  %v197_v16 = vadd.f32 %v192_v12, %v187_v11 }
  0x8d   : > { %198 = vst [vmem:[%s172_s25] sm:$0xff] %v194_v13  ;;  %199 = vst [vmem:[%s172_s25 + $0x8] sm:$0xff] %v195_v14 }
  0x8e   : > { %200 = vst [vmem:[%s172_s25 + $0x10] sm:$0xff] %v196_v15  ;;  %201 = vst [vmem:[%s172_s25 + $0x18] sm:$0xff] %v197_v16 }
  0x8f PF: > { %s13_s12 = sadd.s32 1, %s285_s12  }
  0x90   : > { %p10_p4 = scmp.ge.s32.totalorder %s13_s12, 6  }
  0x92   :  { %12 = sbr.rel (!%p10_p4) target bundleno = 1 (0x1), region = 62 }

</bundles_post_ra>
